<compile_context>
chip_gen: v6e
topology: v6e:2x2x1
jax: 0.10.0
libtpu: 0.0.40
codegen_flags: <defaults>
</compile_context>

<pallas_src>
import functools

import jax
import jax.numpy as jnp
from jax import lax
from jax.experimental import pallas as pl
from jax.experimental.pallas import tpu as pltpu


def _round_up(n, m):
    return ((n + m - 1) // m) * m


def _act(v, activation):
    if activation == "relu":
        return jnp.maximum(v, 0.0)
    elif activation == "sigmoid":
        return jax.nn.sigmoid(v)
    elif activation == "ste":
        # StraightThroughEstimator forward: (v > 0).float()
        return (v > 0.0).astype(v.dtype)
    raise ValueError(f"unknown activation: {activation}")


def _mlp5_kernel(activation, in_dims, out_dims, col_offs, seg_offs, mm_dtype,
                 return_intermediates,
                 x_ref, w_ref, b_ref, slab_ref):
    """Fused 5-layer MLP on a (bm, d_in) batch tile.

    x_ref    : (bm, d_in) in mm_dtype (bf16).
    w_ref    : (max_in_pad, total_out_pad) packed (K, N) weights; layer li's
               columns live at [col_offs[li], col_offs[li] + out_dims[li]).
    b_ref    : (1, total_out_pad) packed f32 biases, same column layout.
    slab_ref : (bm, slab_w) f32; layer li's output at 128-aligned seg_offs[li].
    """
    n = len(out_dims)
    h = x_ref[...]                                       # already mm_dtype
    for li in range(n):
        i, o, c = in_dims[li], out_dims[li], col_offs[li]
        w = w_ref[:i, c:c + o]                           # (i, o) static, aligned cols
        b = b_ref[:, c:c + o]                            # (1, o) f32, aligned
        # Standard (M,K)x(K,N) contraction -> MXU with f32 accumulation.
        z = lax.dot_general(h, w,
                            dimension_numbers=(((1,), (0,)), ((), ())),
                            preferred_element_type=jnp.float32) + b
        if li < n - 1:
            a = _act(z, activation)
            if return_intermediates:
                s = seg_offs[li]
                slab_ref[:, s:s + o] = a                 # aligned segment write
            h = a.astype(mm_dtype)
        else:                                            # sigmoid prob head
            s = seg_offs[-1]
            slab_ref[:, s:s + o] = jax.nn.sigmoid(z)


def pack_mlp5_params(params, matmul_dtype=jnp.bfloat16):
    """One-time packing of the 5 (weight, bias) pairs.

    PyTorch weights are (out, in); they are pre-transposed here to (in, out)
    so the kernel feeds the MXU a standard (K, N) RHS. Each layer's output
    columns start at a 128-lane-aligned offset. Call OUTSIDE the hot path.
    """
    out_dims = tuple(int(w.shape[0]) for w, _ in params)
    in_dims = tuple(int(w.shape[1]) for w, _ in params)
    max_in_pad = _round_up(max(in_dims), 8)
    col_offs, off = [], 0
    for o in out_dims:
        col_offs.append(off)
        off += _round_up(o, 128)
    total_out_pad = off

    w_all = jnp.zeros((max_in_pad, total_out_pad), dtype=matmul_dtype)
    b_all = jnp.zeros((1, total_out_pad), dtype=jnp.float32)
    for li, (w, b) in enumerate(params):
        o, i, c = int(w.shape[0]), int(w.shape[1]), col_offs[li]
        w_all = w_all.at[:i, c:c + o].set(jnp.asarray(w, matmul_dtype).T)
        b_all = b_all.at[:, c:c + o].set(
            jnp.asarray(b, jnp.float32).reshape(1, o))
    return {"w_all": w_all, "b_all": b_all,
            "out_dims": out_dims, "in_dims": in_dims,
            "col_offs": tuple(col_offs), "matmul_dtype": matmul_dtype}


_MAX_BM = 1024     # rows per tile; a few MB of VMEM at these layer widths


def _pick_batch_tile(b_pad):
    if b_pad <= 16:
        return b_pad
    # Aim for >= 2 grid steps so both v7x TensorCores get work; never shrink
    # below 16 rows, never exceed the VMEM-budgeted maximum.
    return min(_MAX_BM, _round_up(pl.cdiv(b_pad, 2), 16))


def mlp5_forward_packed(x, packed, activation="relu", return_intermediates=True):
    """Returns op = [x, h1, h2, h3, h4, prob] matching the PyTorch forward().

    If return_intermediates=False, only prob is computed/written back.
    """
    B, d_in = x.shape
    out_dims, in_dims = packed["out_dims"], packed["in_dims"]
    col_offs = packed["col_offs"]
    w_all, b_all = packed["w_all"], packed["b_all"]
    mm_dtype = packed["matmul_dtype"]
    assert d_in == in_dims[0], "input feature dim mismatch"

    # 128-lane-aligned slab segments (no in-kernel concat / zero pad).
    slab_dims = out_dims if return_intermediates else (out_dims[-1],)
    seg_offs, off = [], 0
    for d in slab_dims:
        seg_offs.append(off)
        off += _round_up(d, 128)
    slab_w = off

    # VMEM-budgeted batch tiling with a cdiv grid (pad batch, slice at the end).
    b_pad = _round_up(B, 16)
    bm = _pick_batch_tile(b_pad)
    n_steps = pl.cdiv(b_pad, bm)
    b_pad = n_steps * bm

    x_mm = x.astype(mm_dtype)
    if b_pad != B:
        x_mm = jnp.zeros((b_pad, d_in), mm_dtype).at[:B, :].set(x_mm)

    itm = jnp.dtype(mm_dtype).itemsize
    w_bytes = w_all.size * itm
    b_bytes = b_all.size * 4
    tile_bytes = bm * d_in * itm + bm * slab_w * 4
    # Weights/biases are block-invariant but still get 2 pipeline buffers by
    # default; for much larger archs mark them pl.Buffered(1) / copy manually.
    vmem_est = 2 * (tile_bytes + w_bytes + b_bytes)
    assert vmem_est < 44 * 1024 * 1024, (
        "resident-weight design exceeds the VMEM budget; tile K/N instead")
    vmem_limit = int(min(max(2 * vmem_est, 16 * 1024 * 1024), 48 * 1024 * 1024))

    flops = 2 * b_pad * sum(i * o for i, o in zip(in_dims, out_dims))
    transc = b_pad * out_dims[-1]
    if activation == "sigmoid":
        transc += b_pad * sum(out_dims[:-1])
    bytes_accessed = x_mm.size * itm + w_bytes + b_bytes + b_pad * slab_w * 4

    kernel = functools.partial(
        _mlp5_kernel, activation, in_dims, out_dims, col_offs,
        tuple(seg_offs), mm_dtype, return_intermediates)

    slab = pl.pallas_call(
        kernel,
        out_shape=jax.ShapeDtypeStruct((b_pad, slab_w), jnp.float32),
        grid=(n_steps,),
        in_specs=[
            pl.BlockSpec((bm, d_in), lambda i: (i, 0)),      # streamed batch tile
            pl.BlockSpec(w_all.shape, lambda i: (0, 0)),     # resident (K,N) weights
            pl.BlockSpec(b_all.shape, lambda i: (0, 0)),     # resident biases
        ],
        out_specs=pl.BlockSpec((bm, slab_w), lambda i: (i, 0)),
        compiler_params=pltpu.CompilerParams(
            dimension_semantics=("parallel",),
            vmem_limit_bytes=vmem_limit),
        cost_estimate=pl.CostEstimate(
            flops=int(flops), transcendentals=int(transc),
            bytes_accessed=int(bytes_accessed)),
    )(x_mm, w_all, b_all)

    if not return_intermediates:
        return slab[:B, :out_dims[-1]]

    outs = [x]
    for li, d in enumerate(out_dims):
        s = seg_offs[li]
        outs.append(slab[:B, s:s + d])
    return outs                                   # [x, h1, h2, h3, h4, prob]


def mlp5_forward(x, params, activation="relu"):
    """API-compat wrapper (packs per call). Prefer pack_mlp5_params once +
    mlp5_forward_packed in a real loop."""
    return mlp5_forward_packed(x, pack_mlp5_params(params), activation)


# ---------------------------- init + reference -----------------------------

def _kaiming_normal(key, out_d, in_d):
    # nn.init.kaiming_normal_ default: fan_in mode => std = sqrt(2 / fan_in)
    std = (2.0 / in_d) ** 0.5
    return std * jax.random.normal(key, (out_d, in_d), dtype=jnp.float32)


def init_mlp5_params(key, arch):
    """arch = [in, w1, w2, w3, w4, out]; biases init to 0 (as in the module)."""
    layer_dims = [(arch[0], arch[1]), (arch[1], arch[2]), (arch[2], arch[3]),
                  (arch[3], arch[4]), (arch[4], arch[-1])]
    params = []
    for (in_d, out_d) in layer_dims:
        key, sub = jax.random.split(key)
        params.append((_kaiming_normal(sub, out_d, in_d),
                       jnp.zeros((out_d,), dtype=jnp.float32)))
    return params


def _ref_forward(x, params, activation, matmul_dtype=jnp.bfloat16):
    """Pure-JAX reference using the same precision policy as the kernel."""
    outs = [x]
    h = jnp.asarray(x, matmul_dtype)
    n = len(params)
    for idx, (w, b) in enumerate(params):
        wt = jnp.asarray(w, matmul_dtype).T            # (in, out)
        z = lax.dot_general(h, wt,
                            dimension_numbers=(((1,), (0,)), ((), ())),
                            preferred_element_type=jnp.float32)
        z = z + jnp.asarray(b, jnp.float32).reshape(1, -1)
        if idx < n - 1:
            a = _act(z, activation)
            outs.append(a)
            h = a.astype(matmul_dtype)
        else:
            outs.append(jax.nn.sigmoid(z))
    return outs


# TODO(synk): set_masks / pruning masks, nn.Dropout (train mode) and the STE
# backward (hardtanh grad) are training-time features with no eval-forward
# effect; not implemented.

if __name__ == "__main__":
    key = jax.random.PRNGKey(0)
    k_x, k_p = jax.random.split(key)

    # small deterministic config: arch = [16, 32, 32, 32, 32, 8], batch = 8
    arch = [16, 32, 32, 32, 32, 8]
    B = 8
    x = jax.random.normal(k_x, (B, arch[0]), dtype=jnp.float32)
    params = init_mlp5_params(k_p, arch)

    packed = pack_mlp5_params(params)                 # one-time packing
    op = mlp5_forward_packed(x, packed, activation="relu")
    op = [jax.block_until_ready(o) for o in op]

    ref = _ref_forward(x, params, "relu")
    assert len(op) == 6
    for got, want in zip(op, ref):
        assert got.shape == want.shape, (got.shape, want.shape)
        assert jnp.allclose(got, want, atol=2e-4, rtol=2e-4), \
            "mismatch vs reference"

    # prob-only fast path (skips h1..h4 writeback entirely)
    prob = mlp5_forward_packed(x, packed, activation="relu",
                               return_intermediates=False)
    prob = jax.block_until_ready(prob)
    assert prob.shape == (B, arch[-1])
    assert jnp.allclose(prob, ref[-1], atol=2e-4, rtol=2e-4)

    print("KERNEL_OK")
</pallas_src>

<mosaic_0001>
module attributes {stable_mosaic.version = 11 : i64} {
  func.func @_mlp5_kernel(%arg0: i32, %arg1: memref<16x16xbf16, #tpu.memory_space<vmem>>, %arg2: memref<32x640xbf16, #tpu.memory_space<vmem>>, %arg3: memref<1x640xf32, #tpu.memory_space<vmem>>, %arg4: memref<16x640xf32, #tpu.memory_space<vmem>>) attributes {dimension_semantics = [#tpu.dimension_semantics<parallel>], iteration_bounds = array<i64: 1>, scalar_prefetch = 0 : i64, scratch_operands = 0 : i64, tpu.core_type = #tpu.core_type<tc>, window_params = [{transform_indices = @transform_0, window_bounds = array<i64: 16, 16>}, {pipeline_mode = #tpu.pipeline_mode<synchronous>, transform_indices = @transform_1, window_bounds = array<i64: 32, 640>}, {pipeline_mode = #tpu.pipeline_mode<synchronous>, transform_indices = @transform_2, window_bounds = array<i64: 1, 640>}, {transform_indices = @transform_3, window_bounds = array<i64: 16, 640>}]} {
    %c0 = arith.constant 0 : index
    %c0_0 = arith.constant 0 : index
    %0 = vector.load %arg1[%c0, %c0_0] : memref<16x16xbf16, #tpu.memory_space<vmem>>, vector<16x16xbf16>
    %c0_1 = arith.constant 0 : index
    %c0_2 = arith.constant 0 : index
    %1 = vector.load %arg2[%c0_1, %c0_2] : memref<32x640xbf16, #tpu.memory_space<vmem>>, vector<16x32xbf16>
    %c0_3 = arith.constant 0 : index
    %c0_4 = arith.constant 0 : index
    %2 = vector.load %arg3[%c0_3, %c0_4] : memref<1x640xf32, #tpu.memory_space<vmem>>, vector<1x32xf32>
    %cst = arith.constant dense<0.000000e+00> : vector<16x32xf32>
    %3 = tpu.matmul %0, %1, %cst {dimension_numbers = #tpu.dot_dimension_numbers<[1], [0], [0], [1], [0, 0, 1, 1], [], []>} : vector<16x16xbf16>, vector<16x32xbf16>, vector<16x32xf32> -> vector<16x32xf32>
    %4 = vector.broadcast %2 : vector<1x32xf32> to vector<16x32xf32>
    %5 = arith.addf %3, %4 : vector<16x32xf32>
    %cst_5 = arith.constant 0.000000e+00 : f32
    %6 = vector.broadcast %cst_5 : f32 to vector<16x32xf32>
    %7 = arith.maximumf %5, %6 : vector<16x32xf32>
    %c0_6 = arith.constant 0 : index
    %c0_7 = arith.constant 0 : index
    %8 = vector.load %arg4[%c0_6, %c0_7] : memref<16x640xf32, #tpu.memory_space<vmem>>, vector<16x32xf32>
    tpu.vector_store %arg4[%c0_6, %c0_7], %7 {strides = array<i32>} : memref<16x640xf32, #tpu.memory_space<vmem>>, vector<16x32xf32>,
    %9 = arith.truncf %7 : vector<16x32xf32> to vector<16x32xbf16>
    %c0_8 = arith.constant 0 : index
    %c128 = arith.constant 128 : index
    %10 = vector.load %arg2[%c0_8, %c128] : memref<32x640xbf16, #tpu.memory_space<vmem>>, vector<32x32xbf16>
    %c0_9 = arith.constant 0 : index
    %c128_10 = arith.constant 128 : index
    %11 = vector.load %arg3[%c0_9, %c128_10] : memref<1x640xf32, #tpu.memory_space<vmem>>, vector<1x32xf32>
    %cst_11 = arith.constant dense<0.000000e+00> : vector<16x32xf32>
    %12 = tpu.matmul %9, %10, %cst_11 {dimension_numbers = #tpu.dot_dimension_numbers<[1], [0], [0], [1], [0, 0, 1, 1], [], []>} : vector<16x32xbf16>, vector<32x32xbf16>, vector<16x32xf32> -> vector<16x32xf32>
    %13 = vector.broadcast %11 : vector<1x32xf32> to vector<16x32xf32>
    %14 = arith.addf %12, %13 : vector<16x32xf32>
    %cst_12 = arith.constant 0.000000e+00 : f32
    %15 = vector.broadcast %cst_12 : f32 to vector<16x32xf32>
    %16 = arith.maximumf %14, %15 : vector<16x32xf32>
    %c0_13 = arith.constant 0 : index
    %c128_14 = arith.constant 128 : index
    %17 = vector.load %arg4[%c0_13, %c128_14] : memref<16x640xf32, #tpu.memory_space<vmem>>, vector<16x32xf32>
    tpu.vector_store %arg4[%c0_13, %c128_14], %16 {strides = array<i32>} : memref<16x640xf32, #tpu.memory_space<vmem>>, vector<16x32xf32>,
    %18 = arith.truncf %16 : vector<16x32xf32> to vector<16x32xbf16>
    %c0_15 = arith.constant 0 : index
    %c256 = arith.constant 256 : index
    %19 = vector.load %arg2[%c0_15, %c256] : memref<32x640xbf16, #tpu.memory_space<vmem>>, vector<32x32xbf16>
    %c0_16 = arith.constant 0 : index
    %c256_17 = arith.constant 256 : index
    %20 = vector.load %arg3[%c0_16, %c256_17] : memref<1x640xf32, #tpu.memory_space<vmem>>, vector<1x32xf32>
    %cst_18 = arith.constant dense<0.000000e+00> : vector<16x32xf32>
    %21 = tpu.matmul %18, %19, %cst_18 {dimension_numbers = #tpu.dot_dimension_numbers<[1], [0], [0], [1], [0, 0, 1, 1], [], []>} : vector<16x32xbf16>, vector<32x32xbf16>, vector<16x32xf32> -> vector<16x32xf32>
    %22 = vector.broadcast %20 : vector<1x32xf32> to vector<16x32xf32>
    %23 = arith.addf %21, %22 : vector<16x32xf32>
    %cst_19 = arith.constant 0.000000e+00 : f32
    %24 = vector.broadcast %cst_19 : f32 to vector<16x32xf32>
    %25 = arith.maximumf %23, %24 : vector<16x32xf32>
    %c0_20 = arith.constant 0 : index
    %c256_21 = arith.constant 256 : index
    %26 = vector.load %arg4[%c0_20, %c256_21] : memref<16x640xf32, #tpu.memory_space<vmem>>, vector<16x32xf32>
    tpu.vector_store %arg4[%c0_20, %c256_21], %25 {strides = array<i32>} : memref<16x640xf32, #tpu.memory_space<vmem>>, vector<16x32xf32>,
    %27 = arith.truncf %25 : vector<16x32xf32> to vector<16x32xbf16>
    %c0_22 = arith.constant 0 : index
    %c384 = arith.constant 384 : index
    %28 = vector.load %arg2[%c0_22, %c384] : memref<32x640xbf16, #tpu.memory_space<vmem>>, vector<32x32xbf16>
    %c0_23 = arith.constant 0 : index
    %c384_24 = arith.constant 384 : index
    %29 = vector.load %arg3[%c0_23, %c384_24] : memref<1x640xf32, #tpu.memory_space<vmem>>, vector<1x32xf32>
    %cst_25 = arith.constant dense<0.000000e+00> : vector<16x32xf32>
    %30 = tpu.matmul %27, %28, %cst_25 {dimension_numbers = #tpu.dot_dimension_numbers<[1], [0], [0], [1], [0, 0, 1, 1], [], []>} : vector<16x32xbf16>, vector<32x32xbf16>, vector<16x32xf32> -> vector<16x32xf32>
    %31 = vector.broadcast %29 : vector<1x32xf32> to vector<16x32xf32>
    %32 = arith.addf %30, %31 : vector<16x32xf32>
    %cst_26 = arith.constant 0.000000e+00 : f32
    %33 = vector.broadcast %cst_26 : f32 to vector<16x32xf32>
    %34 = arith.maximumf %32, %33 : vector<16x32xf32>
    %c0_27 = arith.constant 0 : index
    %c384_28 = arith.constant 384 : index
    %35 = vector.load %arg4[%c0_27, %c384_28] : memref<16x640xf32, #tpu.memory_space<vmem>>, vector<16x32xf32>
    tpu.vector_store %arg4[%c0_27, %c384_28], %34 {strides = array<i32>} : memref<16x640xf32, #tpu.memory_space<vmem>>, vector<16x32xf32>,
    %36 = arith.truncf %34 : vector<16x32xf32> to vector<16x32xbf16>
    %c0_29 = arith.constant 0 : index
    %c512 = arith.constant 512 : index
    %37 = vector.load %arg2[%c0_29, %c512] : memref<32x640xbf16, #tpu.memory_space<vmem>>, vector<32x8xbf16>
    %c0_30 = arith.constant 0 : index
    %c512_31 = arith.constant 512 : index
    %38 = vector.load %arg3[%c0_30, %c512_31] : memref<1x640xf32, #tpu.memory_space<vmem>>, vector<1x8xf32>
    %cst_32 = arith.constant dense<0.000000e+00> : vector<16x8xf32>
    %39 = tpu.matmul %36, %37, %cst_32 {dimension_numbers = #tpu.dot_dimension_numbers<[1], [0], [0], [1], [0, 0, 1, 1], [], []>} : vector<16x32xbf16>, vector<32x8xbf16>, vector<16x8xf32> -> vector<16x8xf32>
    %40 = vector.broadcast %38 : vector<1x8xf32> to vector<16x8xf32>
    %41 = arith.addf %39, %40 : vector<16x8xf32>
    %42 = arith.negf %41 : vector<16x8xf32>
    %43 = math.exp %42 : vector<16x8xf32>
    %cst_33 = arith.constant 1.000000e+00 : f32
    %44 = vector.broadcast %cst_33 : f32 to vector<16x8xf32>
    %45 = arith.addf %44, %43 : vector<16x8xf32>
    %46 = arith.divf %44, %45 : vector<16x8xf32>
    %c0_34 = arith.constant 0 : index
    %c512_35 = arith.constant 512 : index
    %47 = vector.load %arg4[%c0_34, %c512_35] : memref<16x640xf32, #tpu.memory_space<vmem>>, vector<16x8xf32>
    tpu.vector_store %arg4[%c0_34, %c512_35], %46 {strides = array<i32>} : memref<16x640xf32, #tpu.memory_space<vmem>>, vector<16x8xf32>,
    return
  }
  func.func @transform_0(%arg0: i32) -> (i32, i32) {
    %c0_i32 = arith.constant 0 : i32
    %c0_i32_0 = arith.constant 0 : i32
    return %arg0, %c0_i32 : i32, i32
  }
  func.func @transform_1(%arg0: i32) -> (i32, i32) {
    %c0_i32 = arith.constant 0 : i32
    %c0_i32_0 = arith.constant 0 : i32
    %c0_i32_1 = arith.constant 0 : i32
    return %c0_i32, %c0_i32_0 : i32, i32
  }
  func.func @transform_2(%arg0: i32) -> (i32, i32) {
    %c0_i32 = arith.constant 0 : i32
    %c0_i32_0 = arith.constant 0 : i32
    %c0_i32_1 = arith.constant 0 : i32
    return %c0_i32, %c0_i32_0 : i32, i32
  }
  func.func @transform_3(%arg0: i32) -> (i32, i32) {
    %c0_i32 = arith.constant 0 : i32
    %c0_i32_0 = arith.constant 0 : i32
    return %arg0, %c0_i32 : i32, i32
  }
}

</mosaic_0001>

<bundles_post_ra>
// kernel: tpu_custom_call.1
= control target key start
LH: loop header
LB: loop body
LE: loop exit
PB: predicated region body
PF: predicated region fallthrough
CT: control target
= control target key end

     0   :  { %8 = vsyncpa [#allocation3], 0  ;;  %s709_s0 = inlined_call_operand.hbm [shape: bf16[16,16], index: 0, kind: input, shape index: {}]   ;;  %s710_s1 = inlined_call_operand.hbm [shape: bf16[32,640], index: 1, kind: input, shape index: {}]   ;;  %s711_s2 = inlined_call_operand.hbm [shape: f32[1,640], index: 2, kind: input, shape index: {}]   ;;  %s712_s3 = inlined_call_operand.hbm [shape: f32[16,640], index: 3, kind: output, shape index: {}]  }
   0x1   :  { %9 = vsyncpa [#allocation6], 0 }
   0x2   :  { %10 = vsyncpa [#allocation4], 0  ;;  %s634_s12 = smov [#allocation5]  }
   0x3   :  { %s28_s13 = sshll.u32 %s634_s12, 4  ;;  %s29_s13 = int_to_ptr.vmem [resolvable:$true] %s28_s13 }
   0x4   :  { %s556_s14 = scalar_lea.vmem %s29_s13, 1280  ;;  %p561_p1 = scmp.lt.s32.totalorder %s29_s13, %s29_s13 }
   0x5   :  { %p557_p0 = scmp.ne.s32.totalorder %s29_s13, %s556_s14  ;;  %p562_p2 = scmp.lt.s32.totalorder %s556_s14, %s556_s14 }
   0x7   :  { %p563_p3 = por %p562_p2, %p561_p1 }
   0x9   :  { %p564_p4 = pnand %p563_p3, %p557_p0 }
   0xb   :  { %567 = shalt.err (!%p564_p4)
}
   0xc   :  { %s635_s15 = smov 320   ;;  %s636_s16 = smov 20  }
   0xd   :  { %34 = dma.hbm_to_vmem [thread:$0]  %s710_s1, 1280, %s29_s13, [#allocation6], %s635_s15, %s635_s15, %s636_s16  }
   0xe   :  { %s637_s19 = smov [#allocation2]  }
   0xf   :  { %s16_s20 = sshll.u32 %s637_s19, 4  ;;  %s17_s20 = int_to_ptr.vmem [resolvable:$true] %s16_s20 }
  0x10   :  { %s576_s21 = scalar_lea.vmem %s17_s20, 128  ;;  %p581_p6 = scmp.lt.s32.totalorder %s17_s20, %s17_s20 }
  0x11   :  { %p577_p5 = scmp.ne.s32.totalorder %s17_s20, %s576_s21  ;;  %p582_p7 = scmp.lt.s32.totalorder %s576_s21, %s576_s21 }
  0x13   :  { %p583_p8 = por %p582_p7, %p581_p6 }
  0x15   :  { %p584_p9 = pnand %p583_p8, %p577_p5 }
  0x17   :  { %587 = shalt.err (!%p584_p9)
}
  0x18   :  { %s638_s22 = smov 64   ;;  %s639_s23 = smov 4  }
  0x19   :  { %22 = dma.hbm_to_vmem [thread:$0]  %s709_s0, 128, %s17_s20, [#allocation3], %s638_s22, %s638_s22, %s639_s23  }
  0x1a   :  { %s640_s26 = smov [#allocation7]  }
  0x1b   :  { %s41_s27 = sshll.u32 %s640_s26, 4  ;;  %s42_s27 = int_to_ptr.vmem [resolvable:$true] %s41_s27 }
  0x1c   :  { %s596_s1 = scalar_lea.vmem %s42_s27, 80  ;;  %s600_s28 = scalar_lea.vmem %s42_s27, 96 }
  0x1d   :  { %p597_p10 = scmp.ne.s32.totalorder %s42_s27, %s596_s1  ;;  %p601_p11 = scmp.lt.s32.totalorder %s42_s27, %s42_s27 }
  0x1e   :  { %p602_p12 = scmp.lt.s32.totalorder %s600_s28, %s596_s1 }
  0x20   :  { %p603_p13 = por %p602_p12, %p601_p11 }
  0x22   :  { %p604_p0 = pnand %p603_p13, %p597_p10 }
  0x24   :  { %607 = shalt.err (!%p604_p0)
}
  0x25   :  { %44 = dma.hbm_to_vmem [thread:$0]  %s711_s2, 80, %s42_s27, [#allocation6]  }
  0x26   :  { %628 = dma.done.wait [#allocation3], 128  }
  0x27   :  { %629 = vsyncadd [#allocation3], 4294967168 }
  0x28   :  { %630 = dma.done.wait [#allocation6], 1360  }
  0x29   :  { %631 = vsyncadd [#allocation6], 4294965936  ;;  %v641_v0 = vmov 0.0   ;;  %vm642_vm0 = vmmov 0   ;;  %v530_v1 = vld [vmem:[#allocation5] ss:$20 sps:$4 sm:$0xff]  }
  0x2a   :  { %480 = vmatprep.subr.bf16.mxu0 %v641_v0  ;;  %482 = vmatprep.mubr.msk.bf16.mxu0 %vm642_vm0, %v641_v0  ;;  %v531_v2 = vld [vmem:[#allocation2] sm:$0xff]   ;;  %vm77_vm1 = vcmask 130048   ;;  %v532_v3 = vld [vmem:[#allocation5 + $0x2c] ss:$20 sps:$4 sm:$0xff]   ;;  %v444_v5 = vld [vmem:[#allocation7] ss:$0 sm:$0xff] }
  0x2b   :  { %486 = vmatprep.subr.bf16.mxu1 %v641_v0  ;;  %490 = vmatprep.mubr.msk.bf16.mxu1 %vm642_vm0, %v641_v0  ;;  %v533_v4 = vld [vmem:[#allocation5 + $0x4] ss:$20 sps:$4 sm:$0xff]   ;;  %vm124_vm2 = vcmask 261120   ;;  %v535_v16 = vld [vmem:[#allocation5 + $0x8] ss:$20 sps:$4 sm:$0xff]   ;;  %vm423_vm3 = vcmask 64512  }
  0x2c   :  { %481 = vmatpush3.bf16.msra.mxu0 %v530_v1  ;;  %487 = vmatpush3.bf16.msra.mxu1 %v532_v3  ;;  %v534_v15 = vld [vmem:[#allocation5 + $0x30] ss:$20 sps:$4 sm:$0xff]   ;;  %v536_v27 = vld [vmem:[#allocation5 + $0x34] ss:$20 sps:$4 sm:$0xff]   ;;  %v537_v28 = vld [vmem:[#allocation5 + $0xc] ss:$20 sps:$4 sm:$0xff]  }
  0x2d   :  { %494 = vmatprep.subr.bf16.mxu0 %v641_v0  ;;  %488 = vmatprep.subr.bf16.mxu1 %v641_v0  ;;  %v448_v17 = vld [vmem:[#allocation7 + $0x1] ss:$0 sm:$0xff]  ;;  %v452_v29 = vld [vmem:[#allocation7 + $0x2] ss:$0 sm:$0xff]  ;;  %v538_v39 = vld [vmem:[#allocation5 + $0x38] ss:$20 sps:$4 sm:$0xff]  }
  0x2e   :  { %v539_v40 = vld [vmem:[#allocation5 + $0x10] ss:$20 sps:$4 sm:$0xff]   ;;  %v460_v51 = vld [vmem:[#allocation7 + $0x4] ss:$0 sm:$0xff]  ;;  %s643_s0 = smov [#allocation8]  }
  0x2f   :  { %483 = vmatmul.mubr.msk.bf16.vlgmr.msra.gmra.mxu0 %vm77_vm1, %v531_v2  ;;  %v456_v41 = vld [vmem:[#allocation7 + $0x3] ss:$0 sm:$0xff]  ;;  %s431_s2 = sshll.u32 %s643_s0, 4  ;;  %s432_s2 = int_to_ptr.vmem [resolvable:$true] %s431_s2 }
  0x30   :  { %498 = vmatprep.mubr.msk.bf16.mxu0 %vm642_vm0, %v641_v0  ;;  %489 = vmatpush3.bf16.msra.mxu1 %v533_v4  ;;  %s608_s4 = scalar_lea.vmem %s432_s2, 1280  ;;  %p613_p2 = scmp.lt.s32.totalorder %s432_s2, %s432_s2 }
  0x31   :  { %502 = vmatprep.subr.bf16.mxu1 %v641_v0  ;;  %495 = vmatpush3.bf16.msra.mxu0 %v534_v15  ;;  %p609_p1 = scmp.ne.s32.totalorder %s432_s2, %s608_s4  ;;  %p614_p3 = scmp.lt.s32.totalorder %s608_s4, %s608_s4 }
  0x32   :  { %496 = vmatprep.subr.bf16.mxu0 %v641_v0 }
  0x33   :  { %p615_p4 = por %p614_p3, %p613_p2 }
  0x35   :  { %497 = vmatpush3.bf16.msra.mxu0 %v535_v16  ;;  %p616_p5 = pnand %p615_p4, %p609_p1 }
  0x36   :  { %510 = vmatprep.subr.bf16.mxu0 %v641_v0 }
  0xef   :  { %v115_v6 = vpop.f32.mrf.mxu0 }
  0xf0   :  { %v116_v7 = vadd.f32 %v444_v5, %v115_v6 }
  0xf1   :  { %v484_v8 = vpop.f32.mrf.mxu0 }
  0xf2   :  { %v122_v9 = vmax.f32 %v116_v7, 0.0 }
  0xf3   :  { %v118_v10 = vpop.f32.mrf.mxu0 }
  0xf4   :  { %125 = vst.msk [vmem:[#allocation8] sm:$0xff] %vm124_vm2, %v122_v9  ;;  %v119_v11 = vadd.f32 %v444_v5, %v118_v10 }
  0xf5   :  { %v485_v12 = vpop.f32.mrf.mxu0 }
  0xf6   :  { %v123_v13 = vmax.f32 %v119_v11, 0.0 }
  0xf8   :  { %126 = vst.msk [vmem:[#allocation8 + $0x28] sm:$0xff] %vm124_vm2, %v123_v13  ;;  %v127_v14 = vpack.c.bf16 %v123_v13, %v122_v9 }
  0xfa   :  { %491 = vmatmul.mubr.msk.bf16.vlgmr.msra.gmra.mxu1 %vm124_vm2, %v127_v14 }
  0xfb   :  { %506 = vmatprep.mubr.msk.bf16.mxu1 %vm642_vm0, %v641_v0  ;;  %503 = vmatpush3.bf16.msra.mxu1 %v536_v27 }
  0xfc   :  { %504 = vmatprep.subr.bf16.mxu1 %v641_v0 }
  0xff   :  { %505 = vmatpush3.bf16.msra.mxu1 %v537_v28 }
 0x1ba   :  { %v188_v18 = vpop.f32.mrf.mxu1 }
 0x1bb   :  { %v189_v19 = vadd.f32 %v448_v17, %v188_v18 }
 0x1bc   :  { %v492_v20 = vpop.f32.mrf.mxu1 }
 0x1bd   :  { %v195_v21 = vmax.f32 %v189_v19, 0.0 }
 0x1be   :  { %v191_v22 = vpop.f32.mrf.mxu1 }
 0x1bf   :  { %197 = vst.msk [vmem:[#allocation8 + $0x8] sm:$0xff] %vm124_vm2, %v195_v21  ;;  %v192_v23 = vadd.f32 %v448_v17, %v191_v22 }
 0x1c0   :  { %v493_v24 = vpop.f32.mrf.mxu1 }
 0x1c1   :  { %v196_v25 = vmax.f32 %v192_v23, 0.0 }
 0x1c3   :  { %198 = vst.msk [vmem:[#allocation8 + $0x30] sm:$0xff] %vm124_vm2, %v196_v25  ;;  %v199_v26 = vpack.c.bf16 %v196_v25, %v195_v21 }
 0x1c5   :  { %499 = vmatmul.mubr.msk.bf16.vlgmr.msra.gmra.mxu0 %vm124_vm2, %v199_v26 }
 0x1c6   :  { %514 = vmatprep.mubr.msk.bf16.mxu0 %vm642_vm0, %v641_v0  ;;  %511 = vmatpush3.bf16.msra.mxu0 %v538_v39 }
 0x1c7   :  { %512 = vmatprep.subr.bf16.mxu0 %v641_v0 }
 0x1ca   :  { %513 = vmatpush3.bf16.msra.mxu0 %v539_v40 }
 0x285   :  { %v260_v30 = vpop.f32.mrf.mxu0 }
 0x286   :  { %v261_v31 = vadd.f32 %v452_v29, %v260_v30 }
 0x287   :  { %v500_v32 = vpop.f32.mrf.mxu0 }
 0x288   :  { %v267_v33 = vmax.f32 %v261_v31, 0.0 }
 0x289   :  { %v263_v34 = vpop.f32.mrf.mxu0 }
 0x28a   :  { %269 = vst.msk [vmem:[#allocation8 + $0x10] sm:$0xff] %vm124_vm2, %v267_v33  ;;  %v264_v35 = vadd.f32 %v452_v29, %v263_v34 }
 0x28b   :  { %v501_v36 = vpop.f32.mrf.mxu0 }
 0x28c   :  { %v268_v37 = vmax.f32 %v264_v35, 0.0 }
 0x28e   :  { %270 = vst.msk [vmem:[#allocation8 + $0x38] sm:$0xff] %vm124_vm2, %v268_v37  ;;  %v271_v38 = vpack.c.bf16 %v268_v37, %v267_v33 }
 0x290   :  { %507 = vmatmul.mubr.msk.bf16.vlgmr.msra.gmra.mxu1 %vm124_vm2, %v271_v38 }
 0x350   :  { %v332_v42 = vpop.f32.mrf.mxu1 }
 0x351   :  { %v333_v43 = vadd.f32 %v456_v41, %v332_v42 }
 0x352   :  { %v508_v44 = vpop.f32.mrf.mxu1 }
 0x353   :  { %v339_v45 = vmax.f32 %v333_v43, 0.0 }
 0x354   :  { %v335_v46 = vpop.f32.mrf.mxu1 }
 0x355   :  { %341 = vst.msk [vmem:[#allocation8 + $0x18] sm:$0xff] %vm124_vm2, %v339_v45  ;;  %v336_v47 = vadd.f32 %v456_v41, %v335_v46 }
 0x356   :  { %v509_v48 = vpop.f32.mrf.mxu1 }
 0x357   :  { %v340_v49 = vmax.f32 %v336_v47, 0.0 }
 0x359   :  { %342 = vst.msk [vmem:[#allocation8 + $0x40] sm:$0xff] %vm124_vm2, %v340_v49  ;;  %v343_v50 = vpack.c.bf16 %v340_v49, %v339_v45 }
 0x35b   :  { %515 = vmatmul.mubr.msk.bf16.vlgmr.msra.gmra.mxu0 %vm124_vm2, %v343_v50 }
 0x41b   :  { %v404_v52 = vpop.f32.mrf.mxu0 }
 0x41c   :  { %v405_v53 = vadd.f32 %v460_v51, %v404_v52 }
 0x41d   :  { %v516_v54 = vpop.f32.mrf.mxu0 }
 0x41e   :  { %v464_v55 = vmul.f32 -1.442695, %v405_v53 }
 0x41f   :  { %v407_v56 = vpop.f32.mrf.mxu0 }
 0x420   :  { %540 = vpow2.f32 %v464_v55  ;;  %v408_v57 = vadd.f32 %v460_v51, %v407_v56 }
 0x421   :  { %v517_v58 = vpop.f32.mrf.mxu0 }
 0x422   :  { %v465_v59 = vmul.f32 -1.442695, %v408_v57 }
 0x424   :  { %542 = vpow2.f32 %v465_v59 }
 0x42d   :  { %v541_v60 = vpop.eup %540 }
 0x42e   :  { %v417_v61 = vadd.f32 1.0, %v541_v60 }
 0x430   :  { %544 = vrcp.f32 %v417_v61 }
 0x431   :  { %v543_v62 = vpop.eup %542 }
 0x432   :  { %v418_v63 = vadd.f32 1.0, %v543_v62 }
 0x434   :  { %546 = vrcp.f32 %v418_v63 }
 0x43d   :  { %v545_v0 = vpop.eup %544 }
 0x43e   :  { %424 = vst.msk [vmem:[#allocation8 + $0x20] sm:$0xff] %vm423_vm3, %v545_v0 }
 0x441   :  { %v547_v1 = vpop.eup %546 }
 0x442   :  { %425 = vst.msk [vmem:[#allocation8 + $0x48] sm:$0xff] %vm423_vm3, %v547_v1 }
 0x443   :  { %619 = shalt.err (!%p616_p5)
}
 0x444   :  { %s644_s5 = smov 640   ;;  %s645_s6 = smov 40  }
 0x445   :  { %437 = dma.vmem_to_hbm [thread:$0]  %s432_s2, 1280, %s712_s3, [#allocation4], %s644_s5, %s644_s5, %s645_s6  }
 0x446   :  { %632 = dma.done.wait [#allocation4], 1280  }
 0x447   :  { %633 = vsyncadd [#allocation4], 4294966016 }
 0x448   :  { %441 = vsyncpa [#allocation3], 1 }
 0x449   :  { %442 = vsyncpa [#allocation6], 1 }
 0x44a   :  { %443 = vsyncpa [#allocation4], 1 }

</bundles_post_ra>
